<compile_context>
chip_gen: v5e
topology: v5e:2x2
jax: 0.10.0
libtpu: 0.0.40
codegen_flags: <defaults>
</compile_context>

<pallas_src>
import jax
import jax.numpy as jnp
from jax.experimental import pallas as pl
from jax.experimental.pallas import tpu as pltpu

LANE = 128
SUBLANE = 8
NEG_BIG = -1e30  # padded-column bias -> padded softmax probs underflow to exactly 0


def _round_up(v, m):
    return ((v + m - 1) // m) * m


def actor_kernel(x_ref, w_ref, b_ref, o_ref):
    # MXU matmul: bf16 operands, f32 accumulation. If the producer already
    # emits bf16 activations the astype below is a no-op.
    logits = jnp.dot(
        x_ref[...].astype(jnp.bfloat16),
        w_ref[...],
        preferred_element_type=jnp.float32,
    ) + b_ref[...]  # (TB, Apad) + (1, Apad) broadcast, f32

    # Numerically-stable softmax over the lane-dense 128-wide last axis.
    # All f32: v5e has no bf16 VPU/EUP, and precision matters here.
    m = jnp.max(logits, axis=-1, keepdims=True)
    e = jnp.exp(logits - m)
    denom = jnp.sum(e, axis=-1, keepdims=True)
    inv = pl.reciprocal(denom, approx=True)   # EUP slot, ~free
    inv = inv * (2.0 - denom * inv)           # one Newton step -> ~f32-exact normalization
    o_ref[...] = (e * inv).astype(o_ref.dtype)


def actor_forward(x, w, b, *, block_b=None, return_padded=False):
    """Pallas equivalent of `softmax(nn.Linear(512, A)(x), dim=-1)`.

    x: (B, 512) f32 or bf16 activations (pass bf16 from the producer if you
       can — it halves the dominant HBM stream; no wrapper-side cast is added).
    w: (512, A)  (PyTorch stores (A, 512); pass its transpose).
    b: (A,) or (1, A).

    Returns (B, A) f32 probs, or the lane-dense (B, 128) padded slab
    (padded lanes exactly 0) when return_padded=True.
    """
    B, D = x.shape
    A = w.shape[1]
    A_pad = max(LANE, _round_up(A, LANE))

    # Lane-dense padding of the action dim: zero weight columns, -1e30 bias.
    w_pad = (
        jnp.zeros((D, A_pad), jnp.bfloat16)
        .at[:, :A]
        .set(w.astype(jnp.bfloat16))
    )
    b_pad = (
        jnp.full((1, A_pad), NEG_BIG, jnp.float32)
        .at[:, :A]
        .set(jnp.reshape(b, (1, A)).astype(jnp.float32))
    )

    # Batch tile selection (see header). Batch is padded up to the tile so any
    # B works; padded rows are sliced off on return.
    if block_b is None:
        if B <= 128:
            block_b = _round_up(B, SUBLANE)
        elif B <= 4096:
            # two grid steps -> the "parallel" axis shards across v7x's 2 TCs
            block_b = _round_up(pl.cdiv(B, 2), SUBLANE)
        else:
            # large-B streaming: 2048-row tiles (4 MiB f32 / 2 MiB bf16 per x
            # tile) stay within v5e's scoped VMEM even double-buffered.
            block_b = 2048
    B_pad = _round_up(B, block_b)
    if B_pad != B:
        x = jnp.pad(x, ((0, B_pad - B), (0, 0)))
    grid = (B_pad // block_b,)

    x_bytes = B_pad * D * jnp.dtype(x.dtype).itemsize
    probs_pad = pl.pallas_call(
        actor_kernel,
        out_shape=jax.ShapeDtypeStruct((B_pad, A_pad), jnp.float32),
        grid=grid,
        in_specs=[
            pl.BlockSpec((block_b, D), lambda i: (i, 0)),
            pl.BlockSpec((D, A_pad), lambda i: (0, 0)),  # W resident across tiles
            pl.BlockSpec((1, A_pad), lambda i: (0, 0)),  # b resident across tiles
        ],
        out_specs=pl.BlockSpec((block_b, A_pad), lambda i: (i, 0)),
        compiler_params=pltpu.CompilerParams(
            dimension_semantics=("parallel",),
            vmem_limit_bytes=32 * 1024 * 1024,
        ),
        cost_estimate=pl.CostEstimate(
            flops=2 * B_pad * D * A_pad,
            transcendentals=B_pad * A_pad,
            bytes_accessed=x_bytes + 2 * D * A_pad + 4 * A_pad + 4 * B_pad * A_pad,
        ),
    )(x, w_pad, b_pad)

    if return_padded:
        return probs_pad if B_pad == B else probs_pad[:B]
    return probs_pad[:B, :A]


if __name__ == "__main__":
    num_actions = 6
    batch = 8
    in_features = 512

    key = jax.random.PRNGKey(0)
    kx, kw, kb = jax.random.split(key, 3)

    # Deterministic synthetic parameters (PyTorch-Linear-like uniform init).
    bound = 1.0 / (in_features ** 0.5)
    w = jax.random.uniform(
        kw, (in_features, num_actions), jnp.float32, -bound, bound
    )
    b = jax.random.uniform(kb, (1, num_actions), jnp.float32, -bound, bound)
    x = jax.random.normal(kx, (batch, in_features), jnp.float32)

    probs = actor_forward(x, w, b)
    jax.block_until_ready(probs)

    # References: bf16-matmul reference (mirrors kernel arithmetic) and the
    # pure-f32 PyTorch-equivalent reference (loose tolerance: bf16 MXU).
    ref_bf16_logits = (
        jnp.dot(
            x.astype(jnp.bfloat16),
            w.astype(jnp.bfloat16),
            preferred_element_type=jnp.float32,
        )
        + b
    )
    ref_bf16 = jax.nn.softmax(ref_bf16_logits, axis=-1)
    ref_f32 = jax.nn.softmax(x @ w + b, axis=-1)

    assert probs.shape == (batch, num_actions)
    assert jnp.allclose(probs, ref_bf16, atol=3e-3, rtol=3e-3)
    assert jnp.allclose(probs, ref_f32, atol=2e-2, rtol=2e-2)
    # Newton-refined reciprocal -> near-exact row normalization.
    assert jnp.allclose(jnp.sum(probs, axis=-1), 1.0, atol=1e-5)

    # Padded-output path: lane-dense (B, 128) slab with zero padded lanes.
    probs_padded = actor_forward(x, w, b, return_padded=True)
    jax.block_until_ready(probs_padded)
    assert probs_padded.shape == (batch, 128)
    assert jnp.allclose(probs_padded[:, :num_actions], probs, atol=1e-6)
    assert jnp.all(probs_padded[:, num_actions:] == 0.0)

    # Ragged batch (not a multiple of the tile) now works via wrapper padding.
    x_ragged = jax.random.normal(jax.random.PRNGKey(1), (10, in_features), jnp.float32)
    probs_ragged = actor_forward(x_ragged, w, b)
    jax.block_until_ready(probs_ragged)
    assert probs_ragged.shape == (10, num_actions)
    assert jnp.allclose(
        probs_ragged, jax.nn.softmax(x_ragged @ w + b, axis=-1), atol=2e-2, rtol=2e-2
    )

    print("KERNEL_OK")
</pallas_src>

<mosaic_0001>
module attributes {stable_mosaic.version = 11 : i64} {
  func.func @actor_kernel(%arg0: i32, %arg1: memref<8x512xf32, #tpu.memory_space<vmem>>, %arg2: memref<512x128xbf16, #tpu.memory_space<vmem>>, %arg3: memref<1x128xf32, #tpu.memory_space<vmem>>, %arg4: memref<8x128xf32, #tpu.memory_space<vmem>>) attributes {dimension_semantics = [#tpu.dimension_semantics<parallel>], iteration_bounds = array<i64: 1>, scalar_prefetch = 0 : i64, scratch_operands = 0 : i64, tpu.core_type = #tpu.core_type<tc>, window_params = [{transform_indices = @transform_0, window_bounds = array<i64: 8, 512>}, {pipeline_mode = #tpu.pipeline_mode<synchronous>, transform_indices = @transform_1, window_bounds = array<i64: 512, 128>}, {pipeline_mode = #tpu.pipeline_mode<synchronous>, transform_indices = @transform_2, window_bounds = array<i64: 1, 128>}, {transform_indices = @transform_3, window_bounds = array<i64: 8, 128>}]} {
    %c0 = arith.constant 0 : index
    %c0_0 = arith.constant 0 : index
    %0 = vector.load %arg1[%c0, %c0_0] : memref<8x512xf32, #tpu.memory_space<vmem>>, vector<8x512xf32>
    %1 = arith.truncf %0 : vector<8x512xf32> to vector<8x512xbf16>
    %c0_1 = arith.constant 0 : index
    %c0_2 = arith.constant 0 : index
    %2 = vector.load %arg2[%c0_1, %c0_2] : memref<512x128xbf16, #tpu.memory_space<vmem>>, vector<512x128xbf16>
    %cst = arith.constant dense<0.000000e+00> : vector<8x128xf32>
    %3 = tpu.matmul %1, %2, %cst {dimension_numbers = #tpu.dot_dimension_numbers<[1], [0], [0], [1], [0, 0, 1, 1], [], []>} : vector<8x512xbf16>, vector<512x128xbf16>, vector<8x128xf32> -> vector<8x128xf32>
    %c0_3 = arith.constant 0 : index
    %c0_4 = arith.constant 0 : index
    %4 = vector.load %arg3[%c0_3, %c0_4] : memref<1x128xf32, #tpu.memory_space<vmem>>, vector<1x128xf32>
    %5 = vector.broadcast %4 : vector<1x128xf32> to vector<8x128xf32>
    %6 = arith.addf %3, %5 : vector<8x128xf32>
    %cst_5 = arith.constant dense<0xFF800000> : vector<8xf32>
    %7 = vector.multi_reduction <maximumf>, %6, %cst_5 [1] : vector<8x128xf32> to vector<8xf32>
    %8 = vector.shape_cast %7 : vector<8xf32> to vector<8x1xf32>
    %9 = vector.broadcast %8 : vector<8x1xf32> to vector<8x128xf32>
    %10 = arith.subf %6, %9 : vector<8x128xf32>
    %11 = math.exp %10 : vector<8x128xf32>
    %cst_6 = arith.constant dense<0.000000e+00> : vector<8xf32>
    %12 = vector.multi_reduction <add>, %11, %cst_6 [1] : vector<8x128xf32> to vector<8xf32>
    %13 = vector.shape_cast %12 : vector<8xf32> to vector<8x1xf32>
    %14 = tpu.reciprocal %13 {approx = true} : vector<8x1xf32> -> vector<8x1xf32>
    %15 = arith.mulf %13, %14 : vector<8x1xf32>
    %cst_7 = arith.constant 2.000000e+00 : f32
    %16 = vector.broadcast %cst_7 : f32 to vector<8x1xf32>
    %17 = arith.subf %16, %15 : vector<8x1xf32>
    %18 = arith.mulf %14, %17 : vector<8x1xf32>
    %19 = vector.broadcast %18 : vector<8x1xf32> to vector<8x128xf32>
    %20 = arith.mulf %11, %19 : vector<8x128xf32>
    %c0_8 = arith.constant 0 : index
    %c0_9 = arith.constant 0 : index
    %21 = vector.load %arg4[%c0_8, %c0_9] : memref<8x128xf32, #tpu.memory_space<vmem>>, vector<8x128xf32>
    tpu.vector_store %arg4[%c0_8, %c0_9], %20 {strides = array<i32>} : memref<8x128xf32, #tpu.memory_space<vmem>>, vector<8x128xf32>,
    return
  }
  func.func @transform_0(%arg0: i32) -> (i32, i32) {
    %c0_i32 = arith.constant 0 : i32
    %c0_i32_0 = arith.constant 0 : i32
    return %arg0, %c0_i32 : i32, i32
  }
  func.func @transform_1(%arg0: i32) -> (i32, i32) {
    %c0_i32 = arith.constant 0 : i32
    %c0_i32_0 = arith.constant 0 : i32
    %c0_i32_1 = arith.constant 0 : i32
    return %c0_i32, %c0_i32_0 : i32, i32
  }
  func.func @transform_2(%arg0: i32) -> (i32, i32) {
    %c0_i32 = arith.constant 0 : i32
    %c0_i32_0 = arith.constant 0 : i32
    %c0_i32_1 = arith.constant 0 : i32
    return %c0_i32, %c0_i32_0 : i32, i32
  }
  func.func @transform_3(%arg0: i32) -> (i32, i32) {
    %c0_i32 = arith.constant 0 : i32
    %c0_i32_0 = arith.constant 0 : i32
    return %arg0, %c0_i32 : i32, i32
  }
}

</mosaic_0001>

<bundles_post_ra>
// kernel: tpu_custom_call.1
= control target key start
LH: loop header
LB: loop body
LE: loop exit
PB: predicated region body
PF: predicated region fallthrough
CT: control target
= control target key end

     0   :  { %8 = vsyncpa [#allocation3], 0  ;;  %s681_s0 = inlined_call_operand.hbm [shape: f32[8,512], index: 0, kind: input, shape index: {}]   ;;  %s682_s1 = inlined_call_operand.hbm [shape: bf16[512,128], index: 1, kind: input, shape index: {}]   ;;  %s683_s2 = inlined_call_operand.vmem [shape: f32[1,128], index: 2, kind: input, shape index: {}]   ;;  %s684_s3 = inlined_call_operand.hbm [shape: f32[8,128], index: 3, kind: output, shape index: {}]  }
   0x1   :  { %9 = vsyncpa [#allocation6], 0 }
   0x2   :  { %10 = vsyncpa [#allocation4], 0  ;;  %s16_s14 = sshll.u32 %s681_s0, 4  ;;  %s644_s15 = smov [#allocation2]   ;;  %s17_s14 = int_to_ptr.hbm [resolvable:$true] %s16_s14 }
   0x3   :  { %s18_s16 = sshll.u32 %s644_s15, 4  ;;  %s26_s19 = sshll.u32 %s682_s1, 4  ;;  %s19_s16 = int_to_ptr.vmem [resolvable:$true] %s18_s16  ;;  %s27_s19 = int_to_ptr.hbm [resolvable:$true] %s26_s19 }
   0x4   :  { %21 = dma.hbm_to_vmem [thread:$0]  %s17_s14, 512, %s19_s16, [#allocation3]  }
   0x5   :  { %s645_s20 = smov [#allocation5]   ;;  %s646_s22 = smov 64  }
   0x6   :  { %s28_s21 = sshll.u32 %s645_s20, 4  ;;  %s647_s23 = smov 4   ;;  %s29_s21 = int_to_ptr.vmem [resolvable:$true] %s28_s21 }
   0x7   :  { %34 = dma.hbm_to_vmem [thread:$0]  %s27_s19, 4096, %s29_s21, [#allocation6], %s646_s22, %s646_s22, %s647_s23  }
   0x8   :  { %638 = dma.done.wait [#allocation3], 512  }
   0x9   :  { %639 = vsyncadd [#allocation3], 4294966784 }
   0xa   :  { %640 = dma.done.wait [#allocation6], 4096  }
   0xb   :  { %641 = vsyncadd [#allocation6], 4294963200  ;;  %v531_v0 = vld [vmem:[#allocation5 + $0x38] sm:$0xff]  ;;  %v530_v4 = vld [vmem:[#allocation5 + $0x30] sm:$0xff]  ;;  %s385_s27 = sshll.u32 %s684_s3, 4  ;;  %s386_s27 = int_to_ptr.hbm [resolvable:$true] %s385_s27 }
   0xc   :  { %v539_v1 = vld [vmem:[#allocation5 + $0x78] sm:$0xff]  ;;  %313 = vmatpush.bf16.msra.mxu0 %v531_v0  ;;  %v538_v5 = vld [vmem:[#allocation5 + $0x70] sm:$0xff]  ;;  %v529_v8 = vld [vmem:[#allocation5 + $0x28] sm:$0xff] }
   0xd   :  { %v547_v2 = vld [vmem:[#allocation5 + $0xb8] sm:$0xff]  ;;  %326 = vmatpush.bf16.msra.mxu1 %v539_v1  ;;  %v546_v6 = vld [vmem:[#allocation5 + $0xb0] sm:$0xff]  ;;  %v537_v9 = vld [vmem:[#allocation5 + $0x68] sm:$0xff] }
   0xe   :  { %v555_v3 = vld [vmem:[#allocation5 + $0xf8] sm:$0xff]  ;;  %339 = vmatpush.bf16.msra.mxu2 %v547_v2  ;;  %v554_v7 = vld [vmem:[#allocation5 + $0xf0] sm:$0xff]  ;;  %v545_v10 = vld [vmem:[#allocation5 + $0xa8] sm:$0xff] }
   0xf   :  { %352 = vmatpush.bf16.msra.mxu3 %v555_v3  ;;  %v553_v11 = vld [vmem:[#allocation5 + $0xe8] sm:$0xff]  ;;  %v528_v12 = vld [vmem:[#allocation5 + $0x20] sm:$0xff]  ;;  %v527_v16 = vld [vmem:[#allocation5 + $0x18] sm:$0xff] }
  0x10   :  { %314 = vmatpush.bf16.msra.mxu0 %v530_v4  ;;  %v536_v13 = vld [vmem:[#allocation5 + $0x60] sm:$0xff]  ;;  %v535_v17 = vld [vmem:[#allocation5 + $0x58] sm:$0xff]  ;;  %v526_v20 = vld [vmem:[#allocation5 + $0x10] sm:$0xff] }
  0x11   :  { %327 = vmatpush.bf16.msra.mxu1 %v538_v5  ;;  %v544_v14 = vld [vmem:[#allocation5 + $0xa0] sm:$0xff]  ;;  %v543_v18 = vld [vmem:[#allocation5 + $0x98] sm:$0xff]  ;;  %v534_v21 = vld [vmem:[#allocation5 + $0x50] sm:$0xff] }
  0x12   :  { %340 = vmatpush.bf16.msra.mxu2 %v546_v6  ;;  %v552_v15 = vld [vmem:[#allocation5 + $0xe0] sm:$0xff]  ;;  %v551_v19 = vld [vmem:[#allocation5 + $0xd8] sm:$0xff]  ;;  %v542_v22 = vld [vmem:[#allocation5 + $0x90] sm:$0xff] }
  0x13   :  { %353 = vmatpush.bf16.msra.mxu3 %v554_v7  ;;  %v550_v23 = vld [vmem:[#allocation5 + $0xd0] sm:$0xff]  ;;  %v525_v24 = vld [vmem:[#allocation5 + $0x8] sm:$0xff]  ;;  %v524_v28 = vld [vmem:[#allocation5] sm:$0xff] }
  0x14   :  { %315 = vmatpush.bf16.msra.mxu0 %v529_v8  ;;  %v533_v25 = vld [vmem:[#allocation5 + $0x48] sm:$0xff]  ;;  %v532_v29 = vld [vmem:[#allocation5 + $0x40] sm:$0xff]  ;;  %v47_v34 = vld [vmem:[#allocation2 + $0x10] sm:$0xff] }
  0x15   :  { %328 = vmatpush.bf16.msra.mxu1 %v537_v9  ;;  %v541_v26 = vld [vmem:[#allocation5 + $0x88] sm:$0xff]  ;;  %v540_v30 = vld [vmem:[#allocation5 + $0x80] sm:$0xff]  ;;  %v48_v35 = vld [vmem:[#allocation2 + $0x18] sm:$0xff]  ;;  %v51_v38 = vpack.c.bf16 %v47_v34, %v47_v34 }
  0x16   :  { %341 = vmatpush.bf16.msra.mxu2 %v545_v10  ;;  %v549_v27 = vld [vmem:[#allocation5 + $0xc8] sm:$0xff]  ;;  %v45_v31 = vld [vmem:[#allocation2] sm:$0xff]  ;;  %v52_v39 = vpack.c.bf16 %v48_v35, %v48_v35 }
  0x17   :  { %354 = vmatpush.bf16.msra.mxu3 %v553_v11  ;;  %v46_v32 = vld [vmem:[#allocation2 + $0x8] sm:$0xff]  ;;  %v548_v33 = vld [vmem:[#allocation5 + $0xc0] sm:$0xff]  ;;  %v49_v36 = vpack.c.bf16 %v45_v31, %v45_v31 }
  0x18   :  { %316 = vmatpush.bf16.msra.mxu0 %v528_v12  ;;  %v50_v37 = vpack.c.bf16 %v46_v32, %v46_v32  ;;  %v561_v40 = vld [vmem:[%s683_s2] ss:$0 sm:$0xff]  ;;  %s648_s2 = smov [#allocation7]  }
  0x19   :  { %329 = vmatpush.bf16.msra.mxu1 %v536_v13  ;;  %s383_s24 = sshll.u32 %s648_s2, 4  ;;  %s384_s24 = int_to_ptr.vmem [resolvable:$true] %s383_s24 }
  0x1a   :  { %342 = vmatpush.bf16.msra.mxu2 %v544_v14 }
  0x1b   :  { %355 = vmatpush.bf16.msra.mxu3 %v552_v15 }
  0x1c   :  { %317 = vmatpush.bf16.msra.mxu0 %v527_v16 }
  0x1d   :  { %330 = vmatpush.bf16.msra.mxu1 %v535_v17 }
  0x1e   :  { %343 = vmatpush.bf16.msra.mxu2 %v543_v18 }
  0x1f   :  { %356 = vmatpush.bf16.msra.mxu3 %v551_v19 }
  0x20   :  { %318 = vmatpush.bf16.msra.mxu0 %v526_v20 }
  0x21   :  { %331 = vmatpush.bf16.msra.mxu1 %v534_v21 }
  0x22   :  { %344 = vmatpush.bf16.msra.mxu2 %v542_v22 }
  0x23   :  { %357 = vmatpush.bf16.msra.mxu3 %v550_v23 }
  0x24   :  { %319 = vmatpush.bf16.msra.mxu0 %v525_v24 }
  0x25   :  { %332 = vmatpush.bf16.msra.mxu1 %v533_v25 }
  0x26   :  { %345 = vmatpush.bf16.msra.mxu2 %v541_v26 }
  0x27   :  { %358 = vmatpush.bf16.msra.mxu3 %v549_v27 }
  0x28   :  { %320 = vmatpush.bf16.msra.mxu0 %v524_v28 }
  0x29   :  { %333 = vmatpush.bf16.msra.mxu1 %v532_v29 }
  0x2a   :  { %346 = vmatpush.bf16.msra.mxu2 %v540_v30 }
  0x2b   :  { %359 = vmatpush.bf16.msra.mxu3 %v548_v33  ;;  %321 = vmatmul.bf16.vlgmr.msra.gmra.mxu0 %v49_v36 }
  0x2c   :  { %334 = vmatmul.bf16.vlgmr.msra.gmra.mxu1 %v50_v37 }
  0x2d   :  { %347 = vmatmul.bf16.vlgmr.msra.gmra.mxu2 %v51_v38 }
  0x2e   :  { %360 = vmatmul.bf16.vlgmr.msra.gmra.mxu3 %v52_v39 }
  0xa8   :  { %v322_v41 = vpop.f32.mrf.mxu0 }
  0xa9   :  { %v335_v42 = vpop.f32.mrf.mxu1  ;;  %v323_v43 = vadd.f32 %v561_v40, %v322_v41 }
  0xab   :  { %v336_v44 = vadd.f32 %v335_v42, %v323_v43 }
  0xb0   :  { %v348_v45 = vpop.f32.mrf.mxu2  ;;  %v324_v48 = vpop.f32.mrf.mxu0 }
  0xb1   :  { %v361_v46 = vpop.f32.mrf.mxu3  ;;  %v349_v47 = vadd.f32 %v348_v45, %v336_v44  ;;  %v337_v49 = vpop.f32.mrf.mxu1 }
  0xb3   :  { %v362_v50 = vadd.f32 %v361_v46, %v349_v47 }
  0xb5   :  { %365 = vmax.xlane.f32.xlu0 %v362_v50 }
  0xb8   :  { %v350_v51 = vpop.f32.mrf.mxu2 }
  0xb9   :  { %v363_v52 = vpop.f32.mrf.mxu3 }
 0x128   :  { %v366_v53 = vpop.xlane.xlu0 %365 }
 0x129   :  { %v367_v54 = vsub.f32 %v362_v50, %v366_v53 }
 0x12b   :  { %v368_v55 = vmul.f32 1.442695, %v367_v54 }
 0x12d   :  { %562 = vpow2.f32 %v368_v55 }
 0x133   :  { %v563_v56 = vpop.eup %562 }
 0x134   :  { %370 = vadd.xlane.f32.xlu0 %v563_v56 }
 0x1a7   :  { %v371_v57 = vpop.xlane.xlu0 %370 }
 0x1a8   :  { %564 = vrcp.f32 %v371_v57 }
 0x1ae   :  { %v565_v58 = vpop.eup %564 }
 0x1af   :  { %v373_v59 = vmul.f32 %v565_v58, %v371_v57 }
 0x1b1   :  { %v374_v60 = vsub.f32 2.0, %v373_v59 }
 0x1b3   :  { %v375_v61 = vmul.f32 %v565_v58, %v374_v60 }
 0x1b5   :  { %v376_v62 = vmul.f32 %v563_v56, %v375_v61 }
 0x1b7   :  { %377 = vst [vmem:[#allocation7] sm:$0xff] %v376_v62 }
 0x1b8   :  { %388 = dma.vmem_to_hbm [thread:$0]  %s384_s24, 128, %s386_s27, [#allocation4]  }
 0x1b9   :  { %642 = dma.done.wait [#allocation4], 128  }
 0x1ba   :  { %643 = vsyncadd [#allocation4], 4294967168 }
 0x1bb   :  { %393 = vsyncpa [#allocation3], 1 }
 0x1bc   :  { %394 = vsyncpa [#allocation6], 1 }
 0x1bd   :  { %395 = vsyncpa [#allocation4], 1 }

</bundles_post_ra>
